<compile_context>
chip_gen: v7x
topology: tpu7x:2x2x1
jax: 0.10.0
libtpu: 0.0.40
codegen_flags: <defaults>
</compile_context>

<pallas_src>
import functools

import jax
import jax.numpy as jnp
from jax.experimental import pallas as pl
from jax.experimental.pallas import tpu as pltpu

_LANE = 128


def _fused_linear_kernel(img_ref, drv_ref, src_ref,
                         w_img_ref, w_drv_ref, w_src_ref,
                         b_ref, o_ref):
    # x pieces: (B, In_i); w pieces: (OutPad, In_i)  -> contract on In axis.
    dn = (((1,), (1,)), ((), ()))
    acc = jax.lax.dot_general(img_ref[...], w_img_ref[...], dn,
                              preferred_element_type=jnp.float32)
    acc = acc + jax.lax.dot_general(drv_ref[...], w_drv_ref[...], dn,
                                    preferred_element_type=jnp.float32)
    acc = acc + jax.lax.dot_general(src_ref[...], w_src_ref[...], dn,
                                    preferred_element_type=jnp.float32)
    o_ref[...] = (acc + b_ref[...]).astype(o_ref.dtype)


@jax.jit
def _forward_impl(source_image, kp_driving_value, kp_source_value, weight, bias):
    B = source_image.shape[0]
    out_size, in_size = weight.shape

    flat_img = source_image.reshape(B, -1)        # (B, C*H*W)
    flat_drv = kp_driving_value.reshape(B, -1)    # (B, K*D)
    flat_src = kp_source_value.reshape(B, -1)     # (B, K*D)
    n_img = flat_img.shape[1]
    n_drv = flat_drv.shape[1]
    n_src = flat_src.shape[1]
    assert n_img + n_drv + n_src == in_size

    # Split the (Out, In) weight by feature group — no transpose materialized.
    w_img = weight[:, :n_img]
    w_drv = weight[:, n_img:n_img + n_drv]
    w_src = weight[:, n_img + n_drv:]

    # Pad Out to a full lane width (128) for an unmasked, lane-dense store.
    out_pad = max(_LANE, pl.cdiv(out_size, _LANE) * _LANE)
    pad = out_pad - out_size
    if pad:
        w_img = jnp.pad(w_img, ((0, pad), (0, 0)))
        w_drv = jnp.pad(w_drv, ((0, pad), (0, 0)))
        w_src = jnp.pad(w_src, ((0, pad), (0, 0)))
        b_p = jnp.pad(bias, (0, pad))
    else:
        b_p = bias
    b2 = b_p.reshape(1, out_pad)

    flops = 2 * B * in_size * out_pad
    bytes_accessed = 4 * (B * in_size                 # activations in
                          + out_pad * in_size         # weights
                          + out_pad                   # bias
                          + B * out_pad)              # output

    out_padded = pl.pallas_call(
        _fused_linear_kernel,
        out_shape=jax.ShapeDtypeStruct((B, out_pad), source_image.dtype),
        grid=(1,),
        in_specs=[
            pl.BlockSpec((B, n_img), lambda i: (0, 0)),
            pl.BlockSpec((B, n_drv), lambda i: (0, 0)),
            pl.BlockSpec((B, n_src), lambda i: (0, 0)),
            pl.BlockSpec((out_pad, n_img), lambda i: (0, 0)),
            pl.BlockSpec((out_pad, n_drv), lambda i: (0, 0)),
            pl.BlockSpec((out_pad, n_src), lambda i: (0, 0)),
            pl.BlockSpec((1, out_pad), lambda i: (0, 0)),
        ],
        out_specs=pl.BlockSpec((B, out_pad), lambda i: (0, 0)),
        cost_estimate=pl.CostEstimate(flops=flops, transcendentals=0,
                                      bytes_accessed=bytes_accessed),
        compiler_params=pltpu.CompilerParams(
            dimension_semantics=("arbitrary",)),
    )(flat_img, flat_drv, flat_src, w_img, w_drv, w_src, b2)

    return out_padded[:, :out_size]


def model_forward(source_image, kp_driving, kp_source, weight, bias):
    """Mirrors Model.forward: kp_driving/kp_source are dicts with 'value'."""
    out = _forward_impl(source_image, kp_driving["value"], kp_source["value"],
                        weight, bias)
    # Keep the module's print, but outside the jitted region.
    print(
        "\tIn Model: input size",
        source_image.shape,
        kp_driving["value"].shape,
        kp_source["value"].shape,
        "output size",
        out.shape,
    )
    return out


if __name__ == "__main__":
    key = jax.random.PRNGKey(0)
    k_img, k_drv, k_src, k_w, k_b = jax.random.split(key, 5)

    # Small shapes consistent with the forward pass.
    B, C, H, W = 2, 3, 8, 8          # source image (NCHW)
    K, D = 10, 3                     # keypoints: (B, K, D)
    input_size = C * H * W + K * D + K * D   # 192 + 30 + 30 = 252
    output_size = 32

    source_image = jax.random.normal(k_img, (B, C, H, W), dtype=jnp.float32)
    kp_driving = {"value": jax.random.normal(k_drv, (B, K, D), dtype=jnp.float32)}
    kp_source = {"value": jax.random.normal(k_src, (B, K, D), dtype=jnp.float32)}

    # Deterministic Linear parameters (PyTorch layout: weight (Out, In), bias (Out,)).
    bound = 1.0 / (input_size ** 0.5)
    weight = jax.random.uniform(
        k_w, (output_size, input_size), dtype=jnp.float32, minval=-bound, maxval=bound
    )
    bias = jax.random.uniform(
        k_b, (output_size,), dtype=jnp.float32, minval=-bound, maxval=bound
    )

    out = model_forward(source_image, kp_driving, kp_source, weight, bias)
    jax.block_until_ready(out)

    # Sanity check against plain-JAX reference.
    x_ref = jnp.concatenate(
        [source_image.reshape(B, -1),
         kp_driving["value"].reshape(B, -1),
         kp_source["value"].reshape(B, -1)],
        axis=1,
    )
    ref = x_ref @ weight.T + bias
    assert out.shape == (B, output_size)
    assert jnp.allclose(out, ref, atol=1e-5, rtol=1e-5)

    print("KERNEL_OK")
</pallas_src>

<mosaic_0001>
module attributes {stable_mosaic.version = 11 : i64} {
  func.func @_fused_linear_kernel(%arg0: i32, %arg1: memref<2x192xf32, #tpu.memory_space<vmem>>, %arg2: memref<2x30xf32, #tpu.memory_space<vmem>>, %arg3: memref<2x30xf32, #tpu.memory_space<vmem>>, %arg4: memref<128x192xf32, #tpu.memory_space<vmem>>, %arg5: memref<128x30xf32, #tpu.memory_space<vmem>>, %arg6: memref<128x30xf32, #tpu.memory_space<vmem>>, %arg7: memref<1x128xf32, #tpu.memory_space<vmem>>, %arg8: memref<2x128xf32, #tpu.memory_space<vmem>>) attributes {dimension_semantics = [#tpu.dimension_semantics<arbitrary>], iteration_bounds = array<i64: 1>, scalar_prefetch = 0 : i64, scratch_operands = 0 : i64, tpu.core_type = #tpu.core_type<tc>, window_params = [{pipeline_mode = #tpu.pipeline_mode<synchronous>, transform_indices = @transform_0, window_bounds = array<i64: 2, 192>}, {pipeline_mode = #tpu.pipeline_mode<synchronous>, transform_indices = @transform_1, window_bounds = array<i64: 2, 30>}, {pipeline_mode = #tpu.pipeline_mode<synchronous>, transform_indices = @transform_2, window_bounds = array<i64: 2, 30>}, {pipeline_mode = #tpu.pipeline_mode<synchronous>, transform_indices = @transform_3, window_bounds = array<i64: 128, 192>}, {pipeline_mode = #tpu.pipeline_mode<synchronous>, transform_indices = @transform_4, window_bounds = array<i64: 128, 30>}, {pipeline_mode = #tpu.pipeline_mode<synchronous>, transform_indices = @transform_5, window_bounds = array<i64: 128, 30>}, {pipeline_mode = #tpu.pipeline_mode<synchronous>, transform_indices = @transform_6, window_bounds = array<i64: 1, 128>}, {pipeline_mode = #tpu.pipeline_mode<synchronous>, transform_indices = @transform_7, window_bounds = array<i64: 2, 128>}]} {
    %c0 = arith.constant 0 : index
    %c0_0 = arith.constant 0 : index
    %0 = vector.load %arg1[%c0, %c0_0] : memref<2x192xf32, #tpu.memory_space<vmem>>, vector<2x192xf32>
    %c0_1 = arith.constant 0 : index
    %c0_2 = arith.constant 0 : index
    %1 = vector.load %arg4[%c0_1, %c0_2] : memref<128x192xf32, #tpu.memory_space<vmem>>, vector<128x192xf32>
    %cst = arith.constant dense<0.000000e+00> : vector<2x128xf32>
    %2 = tpu.matmul %0, %1, %cst {dimension_numbers = #tpu.dot_dimension_numbers<[1], [1], [0], [0], [0, 0, 1, 0], [], []>} : vector<2x192xf32>, vector<128x192xf32>, vector<2x128xf32> -> vector<2x128xf32>
    %c0_3 = arith.constant 0 : index
    %c0_4 = arith.constant 0 : index
    %3 = vector.load %arg2[%c0_3, %c0_4] : memref<2x30xf32, #tpu.memory_space<vmem>>, vector<2x30xf32>
    %c0_5 = arith.constant 0 : index
    %c0_6 = arith.constant 0 : index
    %4 = vector.load %arg5[%c0_5, %c0_6] : memref<128x30xf32, #tpu.memory_space<vmem>>, vector<128x30xf32>
    %cst_7 = arith.constant dense<0.000000e+00> : vector<2x128xf32>
    %5 = tpu.matmul %3, %4, %cst_7 {dimension_numbers = #tpu.dot_dimension_numbers<[1], [1], [0], [0], [0, 0, 1, 0], [], []>} : vector<2x30xf32>, vector<128x30xf32>, vector<2x128xf32> -> vector<2x128xf32>
    %6 = arith.addf %2, %5 : vector<2x128xf32>
    %c0_8 = arith.constant 0 : index
    %c0_9 = arith.constant 0 : index
    %7 = vector.load %arg3[%c0_8, %c0_9] : memref<2x30xf32, #tpu.memory_space<vmem>>, vector<2x30xf32>
    %c0_10 = arith.constant 0 : index
    %c0_11 = arith.constant 0 : index
    %8 = vector.load %arg6[%c0_10, %c0_11] : memref<128x30xf32, #tpu.memory_space<vmem>>, vector<128x30xf32>
    %cst_12 = arith.constant dense<0.000000e+00> : vector<2x128xf32>
    %9 = tpu.matmul %7, %8, %cst_12 {dimension_numbers = #tpu.dot_dimension_numbers<[1], [1], [0], [0], [0, 0, 1, 0], [], []>} : vector<2x30xf32>, vector<128x30xf32>, vector<2x128xf32> -> vector<2x128xf32>
    %10 = arith.addf %6, %9 : vector<2x128xf32>
    %c0_13 = arith.constant 0 : index
    %c0_14 = arith.constant 0 : index
    %11 = vector.load %arg7[%c0_13, %c0_14] : memref<1x128xf32, #tpu.memory_space<vmem>>, vector<1x128xf32>
    %12 = vector.broadcast %11 : vector<1x128xf32> to vector<2x128xf32>
    %13 = arith.addf %10, %12 : vector<2x128xf32>
    %c0_15 = arith.constant 0 : index
    %c0_16 = arith.constant 0 : index
    %14 = vector.load %arg8[%c0_15, %c0_16] : memref<2x128xf32, #tpu.memory_space<vmem>>, vector<2x128xf32>
    tpu.vector_store %arg8[%c0_15, %c0_16], %13 {strides = array<i32>} : memref<2x128xf32, #tpu.memory_space<vmem>>, vector<2x128xf32>,
    return
  }
  func.func @transform_0(%arg0: i32) -> (i32, i32) {
    %c0_i32 = arith.constant 0 : i32
    %c0_i32_0 = arith.constant 0 : i32
    %c0_i32_1 = arith.constant 0 : i32
    return %c0_i32, %c0_i32_0 : i32, i32
  }
  func.func @transform_1(%arg0: i32) -> (i32, i32) {
    %c0_i32 = arith.constant 0 : i32
    %c0_i32_0 = arith.constant 0 : i32
    %c0_i32_1 = arith.constant 0 : i32
    return %c0_i32, %c0_i32_0 : i32, i32
  }
  func.func @transform_2(%arg0: i32) -> (i32, i32) {
    %c0_i32 = arith.constant 0 : i32
    %c0_i32_0 = arith.constant 0 : i32
    %c0_i32_1 = arith.constant 0 : i32
    return %c0_i32, %c0_i32_0 : i32, i32
  }
  func.func @transform_3(%arg0: i32) -> (i32, i32) {
    %c0_i32 = arith.constant 0 : i32
    %c0_i32_0 = arith.constant 0 : i32
    %c0_i32_1 = arith.constant 0 : i32
    return %c0_i32, %c0_i32_0 : i32, i32
  }
  func.func @transform_4(%arg0: i32) -> (i32, i32) {
    %c0_i32 = arith.constant 0 : i32
    %c0_i32_0 = arith.constant 0 : i32
    %c0_i32_1 = arith.constant 0 : i32
    return %c0_i32, %c0_i32_0 : i32, i32
  }
  func.func @transform_5(%arg0: i32) -> (i32, i32) {
    %c0_i32 = arith.constant 0 : i32
    %c0_i32_0 = arith.constant 0 : i32
    %c0_i32_1 = arith.constant 0 : i32
    return %c0_i32, %c0_i32_0 : i32, i32
  }
  func.func @transform_6(%arg0: i32) -> (i32, i32) {
    %c0_i32 = arith.constant 0 : i32
    %c0_i32_0 = arith.constant 0 : i32
    %c0_i32_1 = arith.constant 0 : i32
    return %c0_i32, %c0_i32_0 : i32, i32
  }
  func.func @transform_7(%arg0: i32) -> (i32, i32) {
    %c0_i32 = arith.constant 0 : i32
    %c0_i32_0 = arith.constant 0 : i32
    %c0_i32_1 = arith.constant 0 : i32
    return %c0_i32, %c0_i32_0 : i32, i32
  }
}

</mosaic_0001>

<bundles_post_ra>
// kernel: _forward_impl.1
= control target key start
LH: loop header
LB: loop body
LE: loop exit
PB: predicated region body
PF: predicated region fallthrough
CT: control target
= control target key end

     0   :  { %vm77_vm0 = vcmask 244736   ;;  %vm209_vm1 = vcmask 523264   ;;  %v781_v3 = vmov 0.0|0.0   ;;  %vm782_vm4 = vmmov 0   ;;  %s1129_s0 = inlined_call_operand.vmem [shape: f32[2,192], index: 0, kind: input, shape index: {}]   ;;  %s1130_s1 = inlined_call_operand.vmem [shape: f32[2,30], index: 1, kind: input, shape index: {}]   ;;  %s1131_s2 = inlined_call_operand.vmem [shape: f32[2,30], index: 2, kind: input, shape index: {}]   ;;  %s1132_s3 = inlined_call_operand.vmem [shape: f32[128,192], index: 3, kind: input, shape index: {}]   ;;  %s1133_s4 = inlined_call_operand.vmem [shape: f32[128,30], index: 4, kind: input, shape index: {}]   ;;  %s1134_s5 = inlined_call_operand.vmem [shape: f32[128,30], index: 5, kind: input, shape index: {}]   ;;  %s1135_s6 = inlined_call_operand.vmem [shape: f32[1,128], index: 6, kind: input, shape index: {}]   ;;  %s1136_s7 = inlined_call_operand.hbm [shape: f32[2,128], index: 7, kind: output, shape index: {}]  }
   0x1   :  { %v61_v0 = vld [vmem:[%s1133_s4] sm:$0xff]  ;;  %v62_v1 = vld [vmem:[%s1133_s4 + $0x8] sm:$0xff]  ;;  %649 = vmatprep.subr.bf16.mxu0 %v781_v3  ;;  %vm837_vm2 = vmpackc.low %vm77_vm0, %vm77_vm0  ;;  %v783_v11 = vmov 0.0  }
   0x2   :  { %v29_v2 = vld [vmem:[%s1132_s3 + $0x8] sm:$0xff]  ;;  %v650_v4 = vpack.c.bf16 %v62_v1, %v61_v0  ;;  %v31_v6 = vld [vmem:[%s1132_s3 + $0x18] sm:$0xff]  ;;  %v28_v7 = vld [vmem:[%s1132_s3] sm:$0xff]  ;;  %611 = vmatprep.mubr.msk.f32.mxu0 %vm782_vm4, %v783_v11 }
   0x3   :  { %v681_v8 = vpack.c.bf16 %v31_v6, %v29_v2  ;;  %vm849_vm3 = vmpackc.low %vm209_vm1, %vm209_vm1  ;;  %v30_v10 = vld [vmem:[%s1132_s3 + $0x10] sm:$0xff]  ;;  %v33_v13 = vld [vmem:[%s1132_s3 + $0x28] sm:$0xff] }
   0x4   :  { %652 = vmatpush3.bf16.xpose.msk.msra.mxu0 %vm837_vm2, %v650_v4  ;;  %v684_v12 = vpack.c.bf16 %v30_v10, %v28_v7  ;;  %v35_v14 = vld [vmem:[%s1132_s3 + $0x38] sm:$0xff]  ;;  %v63_v15 = vld [vmem:[%s1133_s4 + $0x10] sm:$0xff]  ;;  %v32_v18 = vld [vmem:[%s1132_s3 + $0x20] sm:$0xff] }
   0x5   :  { %683 = vmatprep.subr.msk.bf16.mxu1 %vm849_vm3, %v681_v8  ;;  %653 = vmatprep.subr.bf16.mxu0 %v781_v3  ;;  %v64_v16 = vld [vmem:[%s1133_s4 + $0x18] sm:$0xff]  ;;  %v686_v17 = vpack.c.bf16 %v35_v14, %v33_v13  ;;  %v34_v19 = vld [vmem:[%s1132_s3 + $0x30] sm:$0xff]  ;;  %v37_v21 = vld [vmem:[%s1132_s3 + $0x48] sm:$0xff] }
   0x6   :  { %685 = vmatpush1.bf16.xpose.msra.mxu1 %v684_v12  ;;  %v654_v20 = vpack.c.bf16 %v64_v16, %v63_v15  ;;  %v39_v22 = vld [vmem:[%s1132_s3 + $0x58] sm:$0xff]  ;;  %v689_v23 = vpack.c.bf16 %v34_v19, %v32_v18  ;;  %v65_v25 = vld [vmem:[%s1133_s4 + $0x20] sm:$0xff]  ;;  %v66_v26 = vld [vmem:[%s1133_s4 + $0x28] sm:$0xff] }
   0x7   :  { %688 = vmatprep.subr.msk.bf16.mxu1 %vm849_vm3, %v686_v17  ;;  %v691_v24 = vpack.c.bf16 %v39_v22, %v37_v21  ;;  %v36_v27 = vld [vmem:[%s1132_s3 + $0x40] sm:$0xff]  ;;  %v38_v28 = vld [vmem:[%s1132_s3 + $0x50] sm:$0xff]  ;;  %v658_v29 = vpack.c.bf16 %v66_v26, %v65_v25  ;;  %v41_v30 = vld [vmem:[%s1132_s3 + $0x68] sm:$0xff] }
   0x8   :  { %v43_v31 = vld [vmem:[%s1132_s3 + $0x78] sm:$0xff]  ;;  %v694_v32 = vpack.c.bf16 %v38_v28, %v36_v27  ;;  %v915_v33 = vld.sshfl [vmem:[%s1129_s0] sm:$0x33 pattern:$0x76325410]  ;;  %v67_v36 = vld [vmem:[%s1133_s4 + $0x30] sm:$0xff] }
   0x9   :  { %v696_v34 = vpack.c.bf16 %v43_v31, %v41_v30  ;;  %v207_v35 = vcombine.high %v915_v33, %v915_v33  ;;  %v68_v37 = vld [vmem:[%s1133_s4 + $0x38] sm:$0xff]  ;;  %v40_v38 = vld [vmem:[%s1132_s3 + $0x60] sm:$0xff]  ;;  %v42_v39 = vld [vmem:[%s1132_s3 + $0x70] sm:$0xff] }
   0xa   :  { %v662_v40 = vpack.c.bf16 %v68_v37, %v67_v36  ;;  %v45_v41 = vld [vmem:[%s1132_s3 + $0x88] sm:$0xff]  ;;  %v47_v42 = vld [vmem:[%s1132_s3 + $0x98] sm:$0xff] }
   0xb   :  { %526 = vmatprep.mubr.msk.f32.mxu1 %vm209_vm1, %v207_v35 }
   0xc   :  { %656 = vmatpush3.bf16.xpose.msk.msra.mxu0 %vm837_vm2, %v654_v20 }
   0xd   :  { %657 = vmatprep.subr.bf16.mxu0 %v781_v3 }
   0xe   :  { %690 = vmatpush1.bf16.xpose.msra.mxu1 %v689_v23 }
   0xf   :  { %693 = vmatprep.subr.msk.bf16.mxu1 %vm849_vm3, %v691_v24 }
  0x14   :  { %660 = vmatpush3.bf16.xpose.msk.msra.mxu0 %vm837_vm2, %v658_v29 }
  0x15   :  { %661 = vmatprep.subr.bf16.mxu0 %v781_v3 }
  0x16   :  { %695 = vmatpush1.bf16.xpose.msra.mxu1 %v694_v32 }
  0x17   :  { %698 = vmatprep.subr.msk.bf16.mxu1 %vm849_vm3, %v696_v34 }
  0x18   :  { %12 = vsyncpa [#allocation3], 0  ;;  %v699_v43 = vpack.c.bf16 %v42_v39, %v40_v38  ;;  %v701_v44 = vpack.c.bf16 %v47_v42, %v45_v41  ;;  %v69_v45 = vld [vmem:[%s1133_s4 + $0x40] sm:$0xff]  ;;  %v70_v46 = vld [vmem:[%s1133_s4 + $0x48] sm:$0xff] }
  0x19   :  { %v44_v47 = vld [vmem:[%s1132_s3 + $0x80] sm:$0xff]  ;;  %v46_v48 = vld [vmem:[%s1132_s3 + $0x90] sm:$0xff]  ;;  %v666_v49 = vpack.c.bf16 %v70_v46, %v69_v45  ;;  %v49_v50 = vld [vmem:[%s1132_s3 + $0xa8] sm:$0xff] }
  0x1a   :  { %v51_v51 = vld [vmem:[%s1132_s3 + $0xb8] sm:$0xff]  ;;  %v704_v52 = vpack.c.bf16 %v46_v48, %v44_v47  ;;  %v71_v54 = vld [vmem:[%s1133_s4 + $0x50] sm:$0xff]  ;;  %v48_v56 = vld [vmem:[%s1132_s3 + $0xa0] sm:$0xff] }
  0x1b   :  { %v706_v53 = vpack.c.bf16 %v51_v51, %v49_v50  ;;  %v72_v55 = vld [vmem:[%s1133_s4 + $0x58] sm:$0xff]  ;;  %v50_v57 = vld [vmem:[%s1132_s3 + $0xb0] sm:$0xff]  ;;  %v53_v59 = vld [vmem:[%s1132_s3 + $0xc8] sm:$0xff] }
  0x1c   :  { %664 = vmatpush3.bf16.xpose.msk.msra.mxu0 %vm837_vm2, %v662_v40  ;;  %v670_v58 = vpack.c.bf16 %v72_v55, %v71_v54  ;;  %v55_v60 = vld [vmem:[%s1132_s3 + $0xd8] sm:$0xff]  ;;  %v709_v61 = vpack.c.bf16 %v50_v57, %v48_v56  ;;  %v73_v63 = vld [vmem:[%s1133_s4 + $0x60] sm:$0xff]  ;;  %v74_v0 = vld [vmem:[%s1133_s4 + $0x68] sm:$0xff] }
  0x1d   :  { %665 = vmatprep.subr.bf16.mxu0 %v781_v3  ;;  %v711_v62 = vpack.c.bf16 %v55_v60, %v53_v59  ;;  %v52_v1 = vld [vmem:[%s1132_s3 + $0xc0] sm:$0xff]  ;;  %v54_v2 = vld [vmem:[%s1132_s3 + $0xd0] sm:$0xff]  ;;  %v674_v4 = vpack.c.bf16 %v74_v0, %v73_v63  ;;  %v57_v6 = vld [vmem:[%s1132_s3 + $0xe8] sm:$0xff] }
  0x1e   :  { %700 = vmatpush1.bf16.xpose.msra.mxu1 %v699_v43  ;;  %v59_v7 = vld [vmem:[%s1132_s3 + $0xf8] sm:$0xff]  ;;  %v714_v8 = vpack.c.bf16 %v54_v2, %v52_v1  ;;  %v75_v12 = vld [vmem:[%s1133_s4 + $0x70] sm:$0xff]  ;;  %v56_v14 = vld [vmem:[%s1132_s3 + $0xe0] sm:$0xff] }
  0x1f   :  { %703 = vmatprep.subr.msk.bf16.mxu1 %vm849_vm3, %v701_v44  ;;  %v716_v10 = vpack.c.bf16 %v59_v7, %v57_v6  ;;  %v76_v13 = vld [vmem:[%s1133_s4 + $0x78] sm:$0xff]  ;;  %v58_v15 = vld [vmem:[%s1132_s3 + $0xf0] sm:$0xff]  ;;  %v331_v9 = vld [vmem:[%s1134_s5] sm:$0xff] }
  0x20   :  { %v678_v16 = vpack.c.bf16 %v76_v13, %v75_v12  ;;  %v719_v17 = vpack.c.bf16 %v58_v15, %v56_v14  ;;  %v332_v18 = vld [vmem:[%s1134_s5 + $0x8] sm:$0xff]  ;;  %v60_v19 = vld [vmem:[%s1130_s1] sm:$0x3]  ;;  %v333_v21 = vld [vmem:[%s1134_s5 + $0x10] sm:$0xff] }
  0x21   :  { %v722_v20 = vpack.c.bf16 %v332_v18, %v331_v9  ;;  %v334_v22 = vld [vmem:[%s1134_s5 + $0x18] sm:$0xff]  ;;  %v336_v24 = vld [vmem:[%s1134_s5 + $0x28] sm:$0xff]  ;;  %v337_v26 = vld [vmem:[%s1134_s5 + $0x30] sm:$0xff] }
  0x22   :  { %v726_v23 = vpack.c.bf16 %v334_v22, %v333_v21  ;;  %v338_v27 = vld [vmem:[%s1134_s5 + $0x38] sm:$0xff]  ;;  %v339_v29 = vld [vmem:[%s1134_s5 + $0x40] sm:$0xff]  ;;  %v340_v30 = vld [vmem:[%s1134_s5 + $0x48] sm:$0xff] }
  0x23   :  { %v734_v28 = vpack.c.bf16 %v338_v27, %v337_v26  ;;  %v738_v31 = vpack.c.bf16 %v340_v30, %v339_v29  ;;  %v341_v32 = vld [vmem:[%s1134_s5 + $0x50] sm:$0xff]  ;;  %v343_v35 = vld [vmem:[%s1134_s5 + $0x60] sm:$0xff]  ;;  %v344_v36 = vld [vmem:[%s1134_s5 + $0x68] sm:$0xff] }
  0x24   :  { %668 = vmatpush3.bf16.xpose.msk.msra.mxu0 %vm837_vm2, %v666_v49  ;;  %v746_v37 = vpack.c.bf16 %v344_v36, %v343_v35  ;;  %v345_v38 = vld [vmem:[%s1134_s5 + $0x70] sm:$0xff]  ;;  %v346_v39 = vld [vmem:[%s1134_s5 + $0x78] sm:$0xff]  ;;  %v330_v41 = vld [vmem:[%s1131_s2] sm:$0x3] }
  0x25   :  { %669 = vmatprep.subr.bf16.mxu0 %v781_v3  ;;  %v750_v40 = vpack.c.bf16 %v346_v39, %v345_v38  ;;  %v544_v47 = vld [vmem:[%s1135_s6] ss:$0 sm:$0xff] }
  0x26   :  { %705 = vmatpush1.bf16.xpose.msra.mxu1 %v704_v52 }
  0x27   :  { %708 = vmatprep.subr.msk.bf16.mxu1 %vm849_vm3, %v706_v53 }
  0x2c   :  { %672 = vmatpush3.bf16.xpose.msk.msra.mxu0 %vm837_vm2, %v670_v58 }
  0x2d   :  { %673 = vmatprep.subr.bf16.mxu0 %v781_v3 }
  0x2e   :  { %710 = vmatpush1.bf16.xpose.msra.mxu1 %v709_v61 }
  0x2f   :  { %713 = vmatprep.subr.msk.bf16.mxu1 %vm849_vm3, %v711_v62 }
  0x34   :  { %676 = vmatpush3.bf16.xpose.msk.msra.mxu0 %vm837_vm2, %v674_v4 }
  0x35   :  { %677 = vmatprep.subr.bf16.mxu0 %v781_v3 }
  0x36   :  { %715 = vmatpush1.bf16.xpose.msra.mxu1 %v714_v8 }
  0x37   :  { %718 = vmatprep.subr.msk.bf16.mxu1 %vm849_vm3, %v716_v10 }
  0x3c   :  { %680 = vmatpush3.bf16.xpose.msk.msra.mxu0 %vm837_vm2, %v678_v16 }
  0x3d   :  { %721 = vmatprep.subr.bf16.mxu0 %v781_v3 }
  0x3e   :  { %720 = vmatpush1.bf16.xpose.msra.mxu1 %v719_v17 }
  0x43   :  { %612 = vmatmul.mubr.msk.f32.vlgmr.msra.gmra.mrb[0].mxu0 %vm77_vm0, %v60_v19 }
  0x44   :  { %724 = vmatpush3.bf16.xpose.msk.msra.mxu0 %vm837_vm2, %v722_v20  ;;  %646 = vmatprep.mubr.msk.f32.mxu0 %vm782_vm4, %v783_v11  ;;  %v335_v11 = vld [vmem:[%s1134_s5 + $0x20] sm:$0xff] }
  0x45   :  { %325 = vmatmul.mubr.f32.vlgmr.msra.gmra.mrb[0].mxu1 %v915_v33  ;;  %725 = vmatprep.subr.bf16.mxu0 %v781_v3  ;;  %v730_v25 = vpack.c.bf16 %v336_v24, %v335_v11  ;;  %v342_v33 = vld [vmem:[%s1134_s5 + $0x58] sm:$0xff]  ;;  %s784_s5 = smov [#allocation2]  }
  0x46   :  { %v742_v34 = vpack.c.bf16 %v342_v33, %v341_v32  ;;  %s484_s12 = sshll.u32 %s784_s5, 4  ;;  %s485_s12 = int_to_ptr.vmem [resolvable:$true] %s484_s12 }
  0x47   :  { %s757_s2 = scalar_lea.vmem %s485_s12, 32  ;;  %p762_p1 = scmp.lt.s32.totalorder %s485_s12, %s485_s12 }
  0x48   :  { %p758_p0 = scmp.ne.s32.totalorder %s485_s12, %s757_s2  ;;  %p763_p2 = scmp.lt.s32.totalorder %s757_s2, %s757_s2 }
  0x4a   :  { %p764_p3 = por %p763_p2, %p762_p1 }
  0x4c   :  { %728 = vmatpush3.bf16.xpose.msk.msra.mxu0 %vm837_vm2, %v726_v23  ;;  %p765_p4 = pnand %p764_p3, %p758_p0 }
  0x4d   :  { %729 = vmatprep.subr.bf16.mxu0 %v781_v3 }
  0x54   :  { %732 = vmatpush3.bf16.xpose.msk.msra.mxu0 %vm837_vm2, %v730_v25 }
  0x55   :  { %733 = vmatprep.subr.bf16.mxu0 %v781_v3 }
  0x5c   :  { %736 = vmatpush3.bf16.xpose.msk.msra.mxu0 %vm837_vm2, %v734_v28 }
  0x5d   :  { %737 = vmatprep.subr.bf16.mxu0 %v781_v3 }
  0x64   :  { %740 = vmatpush3.bf16.xpose.msk.msra.mxu0 %vm837_vm2, %v738_v31 }
  0x65   :  { %741 = vmatprep.subr.bf16.mxu0 %v781_v3 }
  0x6c   :  { %744 = vmatpush3.bf16.xpose.msk.msra.mxu0 %vm837_vm2, %v742_v34 }
  0x6d   :  { %745 = vmatprep.subr.bf16.mxu0 %v781_v3 }
  0x74   :  { %748 = vmatpush3.bf16.xpose.msk.msra.mxu0 %vm837_vm2, %v746_v37 }
  0x75   :  { %749 = vmatprep.subr.bf16.mxu0 %v781_v3 }
  0x7c   :  { %752 = vmatpush3.bf16.xpose.msk.msra.mxu0 %vm837_vm2, %v750_v40 }
  0x83   :  { %647 = vmatmul.mubr.msk.f32.vlgmr.msra.gmra.mrb[2].mxu0 %vm77_vm0, %v330_v41 }
 0x116   :  { %v195_v42 = vpop.f32.mrb[0].mxu0 }
 0x117   :  { %v613_v3 = vpop.f32.mrb[1].mxu0 }
 0x118   :  { %v326_v43 = vpop.f32.mrb[0].mxu1 }
 0x119   :  { %v327_v44 = vadd.f32 %v326_v43, %v195_v42  ;;  %v328_v45 = vpop.f32.mrb[1].mxu1 }
 0x156   :  { %v464_v46 = vpop.f32.mrb[2].mxu0 }
 0x157   :  { %v468_v5 = vadd.f32 %v464_v46, %v327_v44  ;;  %v648_v48 = vpop.f32.mrb[3].mxu0 }
 0x159   :  { %v476_v49 = vadd.f32 %v544_v47, %v468_v5 }
 0x15b   :  { %477 = vst [vmem:[#allocation2] sm:$0x3] %v476_v49 }
 0x15c   :  { %768 = shalt.err (!%p765_p4)
}
 0x15d   :  { %s769_s15 = scalar_lea.hbm %s1136_s7, 32 }
 0x15e   :  { %p770_p5 = scmp.ne.s32.totalorder %s1136_s7, %s769_s15  ;;  %p773_p6 = scmp.lt.u32.totalorder %s769_s15, %s1136_s7 }
 0x160   :  { %p775_p7 = pnand %p773_p6, %p770_p5 }
 0x162   :  { %778 = shalt.err (!%p775_p7)
}
 0x163   :  { %487 = dma.vmem_to_hbm [thread:$0]  %s485_s12, 32, %s1136_s7, [#allocation3]  }
 0x164   :  { %779 = dma.done.wait [#allocation3], 32  }
 0x165   :  { %780 = vsyncadd [#allocation3], 4294967264 }
 0x166   :  { %491 = vsyncpa [#allocation3], 1 }

</bundles_post_ra>
